<compile_context>
chip_gen: v7x
topology: tpu7x:2x2x1
jax: 0.10.0
libtpu: 0.0.40
codegen_flags: <defaults>
</compile_context>

<pallas_src>
import functools

import jax
import jax.numpy as jnp
from jax.experimental import pallas as pl
from jax.experimental.pallas import tpu as pltpu

_LANE = 128
_SUBLANE = 8


def _round_up(n, m):
    return ((n + m - 1) // m) * m


# --------------------------------------------------------------------------
# Fused kernel: whole ChebGCNX forward on one VMEM-resident block.
# --------------------------------------------------------------------------
def _fused_chebgcnx_kernel(l_ref, x_ref, w_hid_ref, w_out_ref, b_ref, o_ref,
                           *, nlayer, nfeat, nhid):
    """Per layer:  h <- ReLU( h W0 + (L_hat h) W1 + b )   (no ReLU on last).

    l_ref   : (Np, Np)                     bf16   scaled Chebyshev Laplacian
    x_ref   : (Np, nfeat)                  bf16   node features
    w_hid_ref: (2*(nlayer-1), fin_max, nhid) bf16  [W0_l, W1_l] for ReLU layers
    w_out_ref: (2, nhid, out_p)            bf16   final layer, fout padded->128
    b_ref   : (nlayer, bcol)               f32    biases (zero-padded)
    o_ref   : (Np, out_p)                  f32    lane-dense output
    """
    l_hat = l_ref[...]                     # bf16
    h = x_ref[...]                         # bf16

    # Hidden layers (conv1 + convx): bf16 MXU operands, f32 accumulate,
    # bias + ReLU in f32, recast to bf16 for the next layer's matmuls.
    for li in range(nlayer - 1):
        fin = nfeat if li == 0 else nhid
        w0 = w_hid_ref[2 * li][:fin, :]            # (fin, nhid) bf16
        w1 = w_hid_ref[2 * li + 1][:fin, :]
        lx = jnp.dot(l_hat, h,
                     preferred_element_type=jnp.float32).astype(jnp.bfloat16)
        acc = (jnp.dot(h, w0, preferred_element_type=jnp.float32)
               + jnp.dot(lx, w1, preferred_element_type=jnp.float32))
        acc = acc + b_ref[li:li + 1, :nhid]
        h = jnp.maximum(acc, 0.0).astype(jnp.bfloat16)

    # Final layer: no ReLU; weight columns are zero-padded to out_p (multiple
    # of 128) so this store is a full-width, unmasked lane-dense vst.
    w0 = w_out_ref[0]
    w1 = w_out_ref[1]
    lx = jnp.dot(l_hat, h,
                 preferred_element_type=jnp.float32).astype(jnp.bfloat16)
    out = (jnp.dot(h, w0, preferred_element_type=jnp.float32)
           + jnp.dot(lx, w1, preferred_element_type=jnp.float32))
    out = out + b_ref[nlayer - 1:nlayer, :]
    o_ref[...] = out.astype(o_ref.dtype)


# --------------------------------------------------------------------------
# One-time parameter / graph preprocessing (NOT in the per-call forward path).
# --------------------------------------------------------------------------
def pack_chebgcnx(params, l_hat):
    """Pack weights/biases (bf16 / f32) and pad+cast the static Laplacian."""
    layers = [params["conv1"]] + list(params["convx"]) + [params["conv2"]]
    nlayer = len(layers)
    nfeat = layers[0]["w"].shape[1]
    nhid = layers[0]["w"].shape[2]
    nclass = layers[-1]["w"].shape[2]
    n = l_hat.shape[0]

    n_p = _round_up(n, _SUBLANE)
    out_p = _round_up(nclass, _LANE)          # only the HBM output is lane-padded
    fin_max = max(nfeat, nhid)
    bcol = max(nhid, out_p)

    # Hidden-layer weights (conv1 + convx): one contiguous bf16 buffer.
    w_hid = jnp.zeros((2 * (nlayer - 1), fin_max, nhid), jnp.bfloat16)
    b_all = jnp.zeros((nlayer, bcol), jnp.float32)
    for li, layer in enumerate(layers[:-1]):
        fin = layer["w"].shape[1]
        w_hid = w_hid.at[2 * li, :fin, :].set(layer["w"][0].astype(jnp.bfloat16))
        w_hid = w_hid.at[2 * li + 1, :fin, :].set(layer["w"][1].astype(jnp.bfloat16))
        b_all = b_all.at[li, :nhid].set(layer["b"])

    # Final layer: zero-pad fout -> out_p so the kernel's output store is
    # lane-dense; padded columns get zero weight + zero bias (exact).
    w_out = jnp.zeros((2, nhid, out_p), jnp.bfloat16)
    w_out = w_out.at[:, :, :nclass].set(layers[-1]["w"].astype(jnp.bfloat16))
    b_all = b_all.at[nlayer - 1, :nclass].set(layers[-1]["b"])

    l_pad = jnp.zeros((n_p, n_p), jnp.bfloat16).at[:n, :n].set(
        l_hat.astype(jnp.bfloat16))

    arrays = {"l": l_pad, "w_hid": w_hid, "w_out": w_out, "b": b_all}
    meta = {"n": n, "n_p": n_p, "nfeat": nfeat, "nhid": nhid,
            "nclass": nclass, "nlayer": nlayer, "out_p": out_p}
    return arrays, meta


# --------------------------------------------------------------------------
# Per-call forward: pad x, launch the fused kernel, slice off padding.
# --------------------------------------------------------------------------
@functools.partial(jax.jit, static_argnames=("nclass",))
def cheb_gcnx_forward(arrays, x, nclass):
    n, nfeat = x.shape
    l_pad = arrays["l"]
    n_p = l_pad.shape[0]
    nlayer = arrays["b"].shape[0]
    nhid = arrays["w_hid"].shape[-1]
    out_p = arrays["w_out"].shape[-1]

    x_b = x.astype(jnp.bfloat16)
    x_pad = x_b if n == n_p else (
        jnp.zeros((n_p, nfeat), jnp.bfloat16).at[:n, :].set(x_b))

    kernel = functools.partial(_fused_chebgcnx_kernel,
                               nlayer=nlayer, nfeat=nfeat, nhid=nhid)
    vmem = pl.BlockSpec(memory_space=pltpu.MemorySpace.VMEM)
    out_pad = pl.pallas_call(
        kernel,
        out_shape=jax.ShapeDtypeStruct((n_p, out_p), jnp.float32),
        in_specs=[vmem] * 5,
        out_specs=vmem,
    )(l_pad, x_pad, arrays["w_hid"], arrays["w_out"], arrays["b"])
    return out_pad[:n, :nclass]


# --------------------------------------------------------------------------
# Parameter init / graph preprocessing / references.
# --------------------------------------------------------------------------
def _glorot(key, shape):
    fan_in, fan_out = shape[-2], shape[-1]
    limit = (6.0 / (fan_in + fan_out)) ** 0.5
    return jax.random.uniform(key, shape, jnp.float32, -limit, limit)


def init_chebgcnx_params(key, nfeat, nhid, nclass, nlayer=3):
    k = 2  # chebgcn_para1
    keys = jax.random.split(key, nlayer)
    return {
        "conv1": {"w": _glorot(keys[0], (k, nfeat, nhid)),
                  "b": jnp.zeros((nhid,), jnp.float32)},
        "convx": [{"w": _glorot(keys[1 + i], (k, nhid, nhid)),
                   "b": jnp.zeros((nhid,), jnp.float32)}
                  for i in range(nlayer - 2)],
        "conv2": {"w": _glorot(keys[-1], (k, nhid, nclass)),
                  "b": jnp.zeros((nclass,), jnp.float32)},
    }


def scaled_cheb_laplacian(adj):
    """L_hat = 2/lambda_max * (I - D^-1/2 A D^-1/2) - I with lambda_max=2
       == -D^-1/2 A D^-1/2 (torch_geometric ChebConv default)."""
    deg = adj.sum(axis=1)
    d_inv_sqrt = jnp.where(deg > 0, 1.0 / jnp.sqrt(deg), 0.0)
    return -(d_inv_sqrt[:, None] * adj * d_inv_sqrt[None, :])


def _ref_conv(x, l, w, b, relu):
    o = x @ w[0] + (l @ x) @ w[1] + b
    return jnp.maximum(o, 0.0) if relu else o


def _ref_forward(params, x, l_hat):
    h = _ref_conv(x, l_hat, params["conv1"]["w"], params["conv1"]["b"], True)
    for layer in params["convx"]:
        h = _ref_conv(h, l_hat, layer["w"], layer["b"], True)
    return _ref_conv(h, l_hat, params["conv2"]["w"], params["conv2"]["b"], False)


def _ref_forward_bf16(params, x, l_hat):
    """Mirrors the kernel's numerics: bf16 MXU operands, f32 accumulate."""
    layers = [params["conv1"]] + list(params["convx"]) + [params["conv2"]]
    lb = l_hat.astype(jnp.bfloat16)
    h = x.astype(jnp.bfloat16)
    out = None
    for i, layer in enumerate(layers):
        w0 = layer["w"][0].astype(jnp.bfloat16)
        w1 = layer["w"][1].astype(jnp.bfloat16)
        lx = jnp.dot(lb, h, preferred_element_type=jnp.float32).astype(jnp.bfloat16)
        o = (jnp.dot(h, w0, preferred_element_type=jnp.float32)
             + jnp.dot(lx, w1, preferred_element_type=jnp.float32) + layer["b"])
        if i < len(layers) - 1:
            h = jnp.maximum(o, 0.0).astype(jnp.bfloat16)
        else:
            out = o
    return out


if __name__ == "__main__":
    key = jax.random.PRNGKey(0)
    k_adj, k_x, k_p = jax.random.split(key, 3)

    N, nfeat, nhid, nclass = 64, 16, 32, 8
    dropout, nlayer = 0.5, 3

    # Deterministic random undirected graph (no self loops), dense adjacency.
    a = (jax.random.uniform(k_adj, (N, N)) < 0.10).astype(jnp.float32)
    a = jnp.maximum(a, a.T) * (1.0 - jnp.eye(N, dtype=jnp.float32))
    l_hat = scaled_cheb_laplacian(a)

    x = jax.random.normal(k_x, (N, nfeat), jnp.float32)
    params = init_chebgcnx_params(k_p, nfeat, nhid, nclass, nlayer=nlayer)

    # One-time packing (outside the per-call forward path).
    arrays, meta = pack_chebgcnx(params, l_hat)

    out = cheb_gcnx_forward(arrays, x, nclass=meta["nclass"])
    out = jax.block_until_ready(out)

    ref_bf16 = _ref_forward_bf16(params, x, l_hat)   # same numerics as kernel
    ref_f32 = _ref_forward(params, x, l_hat)         # full-precision sanity
    assert out.shape == (N, nclass)
    assert jnp.allclose(out, ref_bf16, atol=2e-3, rtol=2e-3), \
        "mismatch vs. bf16-operand reference"
    assert jnp.allclose(out, ref_f32, atol=1e-1, rtol=1e-1), \
        "mismatch vs. f32 reference (sanity)"

    print("KERNEL_OK")
</pallas_src>

<mosaic_0001>
module attributes {stable_mosaic.version = 11 : i64} {
  func.func @_fused_chebgcnx_kernel(%arg0: memref<64x64xbf16, #tpu.memory_space<vmem>>, %arg1: memref<64x16xbf16, #tpu.memory_space<vmem>>, %arg2: memref<4x32x32xbf16, #tpu.memory_space<vmem>>, %arg3: memref<2x32x128xbf16, #tpu.memory_space<vmem>>, %arg4: memref<3x128xf32, #tpu.memory_space<vmem>>, %arg5: memref<64x128xf32, #tpu.memory_space<vmem>>) attributes {dimension_semantics = [], scalar_prefetch = 0 : i64, scratch_operands = 0 : i64, tpu.core_type = #tpu.core_type<tc>} {
    %c0 = arith.constant 0 : index
    %c0_0 = arith.constant 0 : index
    %0 = vector.load %arg0[%c0, %c0_0] : memref<64x64xbf16, #tpu.memory_space<vmem>>, vector<64x64xbf16>
    %c0_1 = arith.constant 0 : index
    %c0_2 = arith.constant 0 : index
    %1 = vector.load %arg1[%c0_1, %c0_2] : memref<64x16xbf16, #tpu.memory_space<vmem>>, vector<64x16xbf16>
    %c0_3 = arith.constant 0 : index
    %c0_4 = arith.constant 0 : index
    %c0_5 = arith.constant 0 : index
    %2 = vector.load %arg2[%c0_3, %c0_4, %c0_5] : memref<4x32x32xbf16, #tpu.memory_space<vmem>>, vector<1x32x32xbf16>
    %3 = vector.shape_cast %2 : vector<1x32x32xbf16> to vector<32x32xbf16>
    %4 = vector.extract_strided_slice %3 {offsets = [0, 0], sizes = [16, 32], strides = [1, 1]} : vector<32x32xbf16> to vector<16x32xbf16>
    %c1 = arith.constant 1 : index
    %c0_6 = arith.constant 0 : index
    %c0_7 = arith.constant 0 : index
    %5 = vector.load %arg2[%c1, %c0_6, %c0_7] : memref<4x32x32xbf16, #tpu.memory_space<vmem>>, vector<1x32x32xbf16>
    %6 = vector.shape_cast %5 : vector<1x32x32xbf16> to vector<32x32xbf16>
    %7 = vector.extract_strided_slice %6 {offsets = [0, 0], sizes = [16, 32], strides = [1, 1]} : vector<32x32xbf16> to vector<16x32xbf16>
    %cst = arith.constant dense<0.000000e+00> : vector<64x16xf32>
    %8 = tpu.matmul %0, %1, %cst {dimension_numbers = #tpu.dot_dimension_numbers<[1], [0], [0], [1], [0, 0, 1, 1], [], []>} : vector<64x64xbf16>, vector<64x16xbf16>, vector<64x16xf32> -> vector<64x16xf32>
    %9 = arith.truncf %8 : vector<64x16xf32> to vector<64x16xbf16>
    %cst_8 = arith.constant dense<0.000000e+00> : vector<64x32xf32>
    %10 = tpu.matmul %1, %4, %cst_8 {dimension_numbers = #tpu.dot_dimension_numbers<[1], [0], [0], [1], [0, 0, 1, 1], [], []>} : vector<64x16xbf16>, vector<16x32xbf16>, vector<64x32xf32> -> vector<64x32xf32>
    %cst_9 = arith.constant dense<0.000000e+00> : vector<64x32xf32>
    %11 = tpu.matmul %9, %7, %cst_9 {dimension_numbers = #tpu.dot_dimension_numbers<[1], [0], [0], [1], [0, 0, 1, 1], [], []>} : vector<64x16xbf16>, vector<16x32xbf16>, vector<64x32xf32> -> vector<64x32xf32>
    %12 = arith.addf %10, %11 : vector<64x32xf32>
    %c0_10 = arith.constant 0 : index
    %c0_11 = arith.constant 0 : index
    %13 = vector.load %arg4[%c0_10, %c0_11] : memref<3x128xf32, #tpu.memory_space<vmem>>, vector<1x32xf32>
    %14 = vector.broadcast %13 : vector<1x32xf32> to vector<64x32xf32>
    %15 = arith.addf %12, %14 : vector<64x32xf32>
    %cst_12 = arith.constant 0.000000e+00 : f32
    %16 = vector.broadcast %cst_12 : f32 to vector<64x32xf32>
    %17 = arith.maximumf %15, %16 : vector<64x32xf32>
    %18 = arith.truncf %17 : vector<64x32xf32> to vector<64x32xbf16>
    %c2 = arith.constant 2 : index
    %c0_13 = arith.constant 0 : index
    %c0_14 = arith.constant 0 : index
    %19 = vector.load %arg2[%c2, %c0_13, %c0_14] : memref<4x32x32xbf16, #tpu.memory_space<vmem>>, vector<1x32x32xbf16>
    %20 = vector.shape_cast %19 : vector<1x32x32xbf16> to vector<32x32xbf16>
    %c3 = arith.constant 3 : index
    %c0_15 = arith.constant 0 : index
    %c0_16 = arith.constant 0 : index
    %21 = vector.load %arg2[%c3, %c0_15, %c0_16] : memref<4x32x32xbf16, #tpu.memory_space<vmem>>, vector<1x32x32xbf16>
    %22 = vector.shape_cast %21 : vector<1x32x32xbf16> to vector<32x32xbf16>
    %cst_17 = arith.constant dense<0.000000e+00> : vector<64x32xf32>
    %23 = tpu.matmul %0, %18, %cst_17 {dimension_numbers = #tpu.dot_dimension_numbers<[1], [0], [0], [1], [0, 0, 1, 1], [], []>} : vector<64x64xbf16>, vector<64x32xbf16>, vector<64x32xf32> -> vector<64x32xf32>
    %24 = arith.truncf %23 : vector<64x32xf32> to vector<64x32xbf16>
    %cst_18 = arith.constant dense<0.000000e+00> : vector<64x32xf32>
    %25 = tpu.matmul %18, %20, %cst_18 {dimension_numbers = #tpu.dot_dimension_numbers<[1], [0], [0], [1], [0, 0, 1, 1], [], []>} : vector<64x32xbf16>, vector<32x32xbf16>, vector<64x32xf32> -> vector<64x32xf32>
    %cst_19 = arith.constant dense<0.000000e+00> : vector<64x32xf32>
    %26 = tpu.matmul %24, %22, %cst_19 {dimension_numbers = #tpu.dot_dimension_numbers<[1], [0], [0], [1], [0, 0, 1, 1], [], []>} : vector<64x32xbf16>, vector<32x32xbf16>, vector<64x32xf32> -> vector<64x32xf32>
    %27 = arith.addf %25, %26 : vector<64x32xf32>
    %c1_20 = arith.constant 1 : index
    %c0_21 = arith.constant 0 : index
    %28 = vector.load %arg4[%c1_20, %c0_21] : memref<3x128xf32, #tpu.memory_space<vmem>>, vector<1x32xf32>
    %29 = vector.broadcast %28 : vector<1x32xf32> to vector<64x32xf32>
    %30 = arith.addf %27, %29 : vector<64x32xf32>
    %cst_22 = arith.constant 0.000000e+00 : f32
    %31 = vector.broadcast %cst_22 : f32 to vector<64x32xf32>
    %32 = arith.maximumf %30, %31 : vector<64x32xf32>
    %33 = arith.truncf %32 : vector<64x32xf32> to vector<64x32xbf16>
    %c0_23 = arith.constant 0 : index
    %c0_24 = arith.constant 0 : index
    %c0_25 = arith.constant 0 : index
    %34 = vector.load %arg3[%c0_23, %c0_24, %c0_25] : memref<2x32x128xbf16, #tpu.memory_space<vmem>>, vector<1x32x128xbf16>
    %35 = vector.shape_cast %34 : vector<1x32x128xbf16> to vector<32x128xbf16>
    %c1_26 = arith.constant 1 : index
    %c0_27 = arith.constant 0 : index
    %c0_28 = arith.constant 0 : index
    %36 = vector.load %arg3[%c1_26, %c0_27, %c0_28] : memref<2x32x128xbf16, #tpu.memory_space<vmem>>, vector<1x32x128xbf16>
    %37 = vector.shape_cast %36 : vector<1x32x128xbf16> to vector<32x128xbf16>
    %cst_29 = arith.constant dense<0.000000e+00> : vector<64x32xf32>
    %38 = tpu.matmul %0, %33, %cst_29 {dimension_numbers = #tpu.dot_dimension_numbers<[1], [0], [0], [1], [0, 0, 1, 1], [], []>} : vector<64x64xbf16>, vector<64x32xbf16>, vector<64x32xf32> -> vector<64x32xf32>
    %39 = arith.truncf %38 : vector<64x32xf32> to vector<64x32xbf16>
    %cst_30 = arith.constant dense<0.000000e+00> : vector<64x128xf32>
    %40 = tpu.matmul %33, %35, %cst_30 {dimension_numbers = #tpu.dot_dimension_numbers<[1], [0], [0], [1], [0, 0, 1, 1], [], []>} : vector<64x32xbf16>, vector<32x128xbf16>, vector<64x128xf32> -> vector<64x128xf32>
    %cst_31 = arith.constant dense<0.000000e+00> : vector<64x128xf32>
    %41 = tpu.matmul %39, %37, %cst_31 {dimension_numbers = #tpu.dot_dimension_numbers<[1], [0], [0], [1], [0, 0, 1, 1], [], []>} : vector<64x32xbf16>, vector<32x128xbf16>, vector<64x128xf32> -> vector<64x128xf32>
    %42 = arith.addf %40, %41 : vector<64x128xf32>
    %c2_32 = arith.constant 2 : index
    %c0_33 = arith.constant 0 : index
    %43 = vector.load %arg4[%c2_32, %c0_33] : memref<3x128xf32, #tpu.memory_space<vmem>>, vector<1x128xf32>
    %44 = vector.broadcast %43 : vector<1x128xf32> to vector<64x128xf32>
    %45 = arith.addf %42, %44 : vector<64x128xf32>
    %c0_34 = arith.constant 0 : index
    %c0_35 = arith.constant 0 : index
    %46 = vector.load %arg5[%c0_34, %c0_35] : memref<64x128xf32, #tpu.memory_space<vmem>>, vector<64x128xf32>
    tpu.vector_store %arg5[%c0_34, %c0_35], %45 {strides = array<i32>} : memref<64x128xf32, #tpu.memory_space<vmem>>, vector<64x128xf32>,
    return
  }
}

</mosaic_0001>

<bundles_post_ra>
// kernel: cheb_gcnx_forward.1
= control target key start
LH: loop header
LB: loop body
LE: loop exit
PB: predicated region body
PF: predicated region fallthrough
CT: control target
= control target key end

     0   :  { %10 = vsyncpa [#allocation3], 0  ;;  %s1461_s0 = inlined_call_operand.hbm [shape: bf16[64,64], index: 0, kind: input, shape index: {}]   ;;  %s1462_s1 = inlined_call_operand.vmem [shape: bf16[64,16], index: 1, kind: input, shape index: {}]   ;;  %s1463_s2 = inlined_call_operand.vmem [shape: bf16[4,32,32], index: 2, kind: input, shape index: {}]   ;;  %s1464_s3 = inlined_call_operand.hbm [shape: bf16[2,32,128], index: 3, kind: input, shape index: {}]   ;;  %s1465_s4 = inlined_call_operand.vmem [shape: f32[3,128], index: 4, kind: input, shape index: {}]   ;;  %s1466_s5 = inlined_call_operand.vmem [shape: f32[64,128], index: 5, kind: output, shape index: {}]  }
   0x1   :  { %11 = vsyncpa [#allocation5], 0  ;;  %s1289_s18 = smov [#allocation2]   ;;  %s1241_s22 = scalar_lea.hbm %s1461_s0, 512 }
   0x2   :  { %s17_s19 = sshll.u32 %s1289_s18, 4  ;;  %p1242_p0 = scmp.ne.s32.totalorder %s1461_s0, %s1241_s22  ;;  %s18_s19 = int_to_ptr.vmem [resolvable:$true] %s17_s19 }
   0x3   :  { %p1245_p1 = scmp.lt.u32.totalorder %s1241_s22, %s1461_s0 }
   0x5   :  { %p1247_p2 = pnand %p1245_p1, %p1242_p0 }
   0x7   :  { %1250 = shalt.err (!%p1247_p2)
}
   0x8   :  { %s1251_s27 = scalar_lea.vmem %s18_s19, 512  ;;  %p1256_p4 = scmp.lt.s32.totalorder %s18_s19, %s18_s19 }
   0x9   :  { %p1252_p3 = scmp.ne.s32.totalorder %s18_s19, %s1251_s27  ;;  %p1257_p5 = scmp.lt.s32.totalorder %s1251_s27, %s1251_s27 }
   0xb   :  { %p1258_p6 = por %p1257_p5, %p1256_p4 }
   0xd   :  { %p1259_p7 = pnand %p1258_p6, %p1252_p3 }
   0xf   :  { %1262 = shalt.err (!%p1259_p7)
}
  0x10   :  { %s1290_s28 = smov 64   ;;  %s1291_s29 = smov 4  }
  0x11   :  { %23 = dma.hbm_to_vmem [thread:$0]  %s1461_s0, 512, %s18_s19, [#allocation3], %s1290_s28, %s1290_s28, %s1291_s29  }
  0x12   :  { %s1292_s7 = smov [#allocation4]   ;;  %s1263_s11 = scalar_lea.hbm %s1464_s3, 512 }
  0x13   :  { %s33_s8 = sshll.u32 %s1292_s7, 4  ;;  %p1264_p8 = scmp.ne.s32.totalorder %s1464_s3, %s1263_s11  ;;  %s34_s8 = int_to_ptr.vmem [resolvable:$true] %s33_s8 }
  0x14   :  { %p1267_p9 = scmp.lt.u32.totalorder %s1263_s11, %s1464_s3 }
  0x16   :  { %p1269_p10 = pnand %p1267_p9, %p1264_p8 }
  0x18   :  { %1272 = shalt.err (!%p1269_p10)
}
  0x19   :  { %s1273_s16 = scalar_lea.vmem %s34_s8, 512  ;;  %p1278_p12 = scmp.lt.s32.totalorder %s34_s8, %s34_s8 }
  0x1a   :  { %p1274_p11 = scmp.ne.s32.totalorder %s34_s8, %s1273_s16  ;;  %p1279_p13 = scmp.lt.s32.totalorder %s1273_s16, %s1273_s16 }
  0x1c   :  { %p1280_p0 = por %p1279_p13, %p1278_p12 }
  0x1e   :  { %p1281_p1 = pnand %p1280_p0, %p1274_p11 }
  0x20   :  { %1284 = shalt.err (!%p1281_p1)
}
  0x21   :  { %39 = dma.hbm_to_vmem [thread:$0]  %s1464_s3, 512, %s34_s8, [#allocation5], %s1290_s28, %s1290_s28, %s1291_s29  }
  0x22   :  { %1285 = dma.done.wait [#allocation3], 512  }
  0x23   :  { %1286 = vsyncadd [#allocation3], 4294966784 }
  0x24   :  { %1287 = dma.done.wait [#allocation5], 512  }
  0x25   :  { %1288 = vsyncadd [#allocation5], 4294966784  ;;  %v1223_v0 = vld [vmem:[%s1462_s1] sm:$0xff]   ;;  %v1224_v1 = vld [vmem:[%s1462_s1 + $0x8] sm:$0xff]   ;;  %vm114_vm0 = vcmask 523264   ;;  %vm202_vm1 = vcmask 130048  }
  0x26   :  { %1079 = vmatprep.subr.bf16.mxu0 %v1223_v0  ;;  %v1225_v2 = vld [vmem:[%s1462_s1 + $0x10] sm:$0xff]   ;;  %v1227_v3 = vld [vmem:[#allocation2] sm:$0xff]   ;;  %v1226_v4 = vld [vmem:[%s1462_s1 + $0x18] sm:$0xff]   ;;  %vm479_vm2 = vcmask 261120  }
  0x27   :  { %1080 = vmatpush3.bf16.msra.mxu0 %v1223_v0  ;;  %1087 = vmatprep.mubr.msk.bf16.mxu0 %vm114_vm0, %v1227_v3  ;;  %v1360_v5 = vld [vmem:[#allocation2 + $0x8] sm:$0xff]   ;;  %v1362_v6 = vld [vmem:[#allocation2 + $0x10] sm:$0xff]   ;;  %v1368_v7 = vld [vmem:[#allocation2 + $0x18] sm:$0xff]  }
  0x28   :  { %1081 = vmatprep.subr.bf16.mxu0 %v1224_v1  ;;  %v1231_v8 = vld [vmem:[%s1463_s2 + $0x10] sm:$0xff]   ;;  %v1232_v9 = vld [vmem:[%s1463_s2] sm:$0xff]   ;;  %v1234_v52 = vld [vmem:[%s1463_s2 + $0x38] sm:$0xff]  }
  0x29   :  { %1095 = vmatprep.subr.bf16.mxu1 %v1231_v8  ;;  %v978_v22 = vld [vmem:[%s1465_s4] ss:$0 sm:$0xff]  ;;  %v1233_v51 = vld [vmem:[%s1463_s2 + $0x30] sm:$0xff]   ;;  %v1236_v60 = vld [vmem:[%s1463_s2 + $0x28] sm:$0xff]  }
  0x2a   :  { %1096 = vmatpush3.bf16.msra.mxu1 %v1231_v8  ;;  %v1235_v53 = vld [vmem:[%s1463_s2 + $0x20] sm:$0xff]  }
  0x2b   :  { %1082 = vmatpush3.bf16.msra.mxu0 %v1224_v1  ;;  %1105 = vmatprep.subr.bf16.mxu1 %v1232_v9 }
  0x2c   :  { %1083 = vmatprep.subr.bf16.mxu0 %v1225_v2 }
  0x2f   :  { %1084 = vmatpush3.bf16.msra.mxu0 %v1225_v2 }
  0x30   :  { %1085 = vmatprep.subr.bf16.mxu0 %v1226_v4 }
  0x33   :  { %1086 = vmatpush3.bf16.msra.mxu0 %v1226_v4 }
  0x36   :  { %1088 = vmatmul.mubr.msk.bf16.vlgmr.msra.gmra.mrb[0].mxu0 %vm114_vm0, %v1360_v5 }
  0x37   :  { %1091 = vmatprep.mubr.msk.bf16.mxu0 %vm114_vm0, %v1362_v6 }
  0x3e   :  { %1092 = vmatmul.mubr.msk.bf16.gmra.mrb[4].mxu0 %vm114_vm0, %v1368_v7 }
  0x3f   :  { %1163 = vmatprep.mubr.msk.bf16.mxu0 %vm114_vm0, %v1227_v3 }
 0x109   :  { %v1089_v10 = vpop.f32.mrb[0].mxu0 }
 0x10a   :  { %v161_v11 = vpop.f32.mrb[1].mxu0 }
 0x10b   :  { %v1090_v12 = vpop.f32.mrb[2].mxu0 }
 0x10c   :  { %v193_v13 = vpack.c.bf16 %v1090_v12, %v1089_v10  ;;  %v164_v14 = vpop.f32.mrb[3].mxu0 }
 0x10d   :  { %v192_v15 = vpack.c.bf16 %v164_v14, %v161_v11 }
 0x10f   :  { %1097 = vmatprep.mubr.msk.bf16.mxu1 %vm202_vm1, %v192_v15 }
 0x110   :  { %1098 = vmatmul.mubr.msk.bf16.vlgmr.msra.gmra.mrb[0].mxu1 %vm202_vm1, %v193_v13 }
 0x111   :  { %v1093_v16 = vpop.f32.mrb[4].mxu0  ;;  %1106 = vmatpush3.bf16.msra.mxu1 %v1232_v9 }
 0x112   :  { %v177_v17 = vpop.f32.mrb[5].mxu0 }
 0x113   :  { %v1094_v18 = vpop.f32.mrb[6].mxu0 }
 0x114   :  { %v195_v19 = vpack.c.bf16 %v1094_v18, %v1093_v16  ;;  %v180_v20 = vpop.f32.mrb[7].mxu0 }
 0x115   :  { %v194_v21 = vpack.c.bf16 %v180_v20, %v177_v17 }
 0x117   :  { %1101 = vmatprep.mubr.msk.bf16.mxu1 %vm202_vm1, %v194_v21 }
 0x118   :  { %1102 = vmatmul.mubr.msk.bf16.gmra.mrb[4].mxu1 %vm202_vm1, %v195_v19 }
 0x119   :  { %1107 = vmatprep.mubr.msk.bf16.mxu1 %vm202_vm1, %v1223_v0 }
 0x120   :  { %1108 = vmatmul.mubr.msk.bf16.vlgmr.msra.gmra.mrb[0].mxu1 %vm202_vm1, %v1224_v1 }
 0x121   :  { %1111 = vmatprep.mubr.msk.bf16.mxu1 %vm202_vm1, %v1225_v2 }
 0x128   :  { %1112 = vmatmul.mubr.msk.bf16.gmra.mrb[4].mxu1 %vm202_vm1, %v1226_v4 }
 0x129   :  { %1123 = vmatprep.mubr.msk.bf16.mxu1 %vm114_vm0, %v1227_v3  ;;  %v1003_v3 = vld [vmem:[%s1465_s4 + $0x1] ss:$0 sm:$0xff] }
 0x1f3   :  { %v1109_v23 = vpop.f32.mrb[0].mxu1 }
 0x1f4   :  { %v370_v24 = vadd.f32 %v1109_v23, %v978_v22  ;;  %v332_v25 = vpop.f32.mrb[1].mxu1 }
 0x1f5   :  { %v368_v26 = vadd.f32 %v978_v22, %v332_v25  ;;  %v1110_v27 = vpop.f32.mrb[2].mxu1 }
 0x1f6   :  { %v371_v28 = vadd.f32 %v1110_v27, %v978_v22  ;;  %v335_v29 = vpop.f32.mrb[3].mxu1  ;;  %v378_v31 = vmax.f32 %v370_v24, 0.0 }
 0x1f7   :  { %v369_v30 = vadd.f32 %v978_v22, %v335_v29  ;;  %v376_v33 = vmax.f32 %v368_v26, 0.0 }
 0x1f8   :  { %v379_v32 = vmax.f32 %v371_v28, 0.0 }
 0x1f9   :  { %v377_v34 = vmax.f32 %v369_v30, 0.0 }
 0x1fa   :  { %v385_v35 = vpack.c.bf16 %v379_v32, %v378_v31 }
 0x1fb   :  { %v384_v36 = vpack.c.bf16 %v377_v34, %v376_v33  ;;  %v1113_v37 = vpop.f32.mrb[4].mxu1 }
 0x1fc   :  { %v374_v38 = vadd.f32 %v1113_v37, %v978_v22  ;;  %v348_v39 = vpop.f32.mrb[5].mxu1  ;;  %v1239_v37 = vld [vmem:[#allocation4] sm:$0xff]  }
 0x1fd   :  { %v372_v40 = vadd.f32 %v978_v22, %v348_v39  ;;  %v1114_v41 = vpop.f32.mrb[6].mxu1  ;;  %1115 = vmatprep.subr.bf16.mxu1 %v384_v36 }
 0x1fe   :  { %v375_v42 = vadd.f32 %v1114_v41, %v978_v22  ;;  %v351_v43 = vpop.f32.mrb[7].mxu1  ;;  %1116 = vmatpush3.bf16.msra.mxu1 %v384_v36  ;;  %v382_v45 = vmax.f32 %v374_v38, 0.0 }
 0x1ff   :  { %v373_v44 = vadd.f32 %v978_v22, %v351_v43  ;;  %1117 = vmatprep.subr.bf16.mxu1 %v385_v35  ;;  %v380_v47 = vmax.f32 %v372_v40, 0.0 }
 0x200   :  { %v383_v46 = vmax.f32 %v375_v42, 0.0 }
 0x201   :  { %v381_v48 = vmax.f32 %v373_v44, 0.0  ;;  %v1240_v44 = vld [vmem:[#allocation4 + $0x8] sm:$0xff]  }
 0x202   :  { %v387_v49 = vpack.c.bf16 %v383_v46, %v382_v45  ;;  %1118 = vmatpush3.bf16.msra.mxu1 %v385_v35 }
 0x203   :  { %v386_v50 = vpack.c.bf16 %v381_v48, %v380_v47  ;;  %v1020_v48 = vld [vmem:[%s1465_s4 + $0x2] ss:$0 sm:$0xff] }
 0x205   :  { %1119 = vmatprep.subr.bf16.mxu1 %v386_v50 }
 0x206   :  { %1120 = vmatpush3.bf16.msra.mxu1 %v386_v50 }
 0x207   :  { %1121 = vmatprep.subr.bf16.mxu1 %v387_v49 }
 0x20a   :  { %1122 = vmatpush3.bf16.msra.mxu1 %v387_v49 }
 0x20b   :  { %1131 = vmatprep.subr.bf16.mxu1 %v1233_v51 }
 0x20d   :  { %1124 = vmatmul.mubr.msk.bf16.vlgmr.msra.gmra.mrb[8].mxu1 %vm114_vm0, %v1360_v5 }
 0x20e   :  { %1127 = vmatprep.mubr.msk.bf16.mxu1 %vm114_vm0, %v1362_v6  ;;  %1132 = vmatpush3.bf16.msra.mxu1 %v1233_v51 }
 0x20f   :  { %1133 = vmatprep.subr.bf16.mxu1 %v1234_v52 }
 0x212   :  { %1134 = vmatpush3.bf16.msra.mxu1 %v1234_v52 }
 0x213   :  { %1143 = vmatprep.subr.bf16.mxu1 %v1235_v53 }
 0x215   :  { %1128 = vmatmul.mubr.msk.bf16.gmra.mrb[12].mxu1 %vm114_vm0, %v1368_v7 }
 0x2e0   :  { %v1125_v54 = vpop.f32.mrb[8].mxu1 }
 0x2e1   :  { %v432_v55 = vpop.f32.mrb[9].mxu1 }
 0x2e2   :  { %v1126_v56 = vpop.f32.mrb[10].mxu1 }
 0x2e3   :  { %v464_v57 = vpack.c.bf16 %v1126_v56, %v1125_v54  ;;  %v435_v58 = vpop.f32.mrb[11].mxu1 }
 0x2e4   :  { %v463_v59 = vpack.c.bf16 %v435_v58, %v432_v55 }
 0x2e6   :  { %1135 = vmatprep.mubr.msk.bf16.mxu1 %vm479_vm2, %v463_v59 }
 0x2e7   :  { %1136 = vmatmul.mubr.msk.bf16.vlgmr.msra.gmra.mrb[16].mxu1 %vm479_vm2, %v464_v57 }
 0x2e8   :  { %v1129_v61 = vpop.f32.mrb[12].mxu1  ;;  %1144 = vmatpush3.bf16.msra.mxu1 %v1235_v53 }
 0x2e9   :  { %v448_v62 = vpop.f32.mrb[13].mxu1  ;;  %1145 = vmatprep.subr.bf16.mxu1 %v1236_v60 }
 0x2ea   :  { %v1130_v63 = vpop.f32.mrb[14].mxu1 }
 0x2eb   :  { %v466_v0 = vpack.c.bf16 %v1130_v63, %v1129_v61  ;;  %v451_v1 = vpop.f32.mrb[15].mxu1 }
 0x2ec   :  { %v465_v2 = vpack.c.bf16 %v451_v1, %v448_v62  ;;  %1146 = vmatpush3.bf16.msra.mxu1 %v1236_v60 }
 0x2ee   :  { %1139 = vmatprep.mubr.msk.bf16.mxu1 %vm479_vm2, %v465_v2 }
 0x2ef   :  { %1140 = vmatmul.mubr.msk.bf16.gmra.mrb[20].mxu1 %vm479_vm2, %v466_v0 }
 0x2f0   :  { %1147 = vmatprep.mubr.msk.bf16.mxu1 %vm479_vm2, %v384_v36  ;;  %v1238_v36 = vld [vmem:[#allocation4 + $0x18] sm:$0xff]  }
 0x2f7   :  { %1148 = vmatmul.mubr.msk.bf16.vlgmr.msra.gmra.mrb[16].mxu1 %vm479_vm2, %v385_v35  ;;  %v1237_v35 = vld [vmem:[#allocation4 + $0x10] sm:$0xff]  }
 0x2f8   :  { %1151 = vmatprep.mubr.msk.bf16.mxu1 %vm479_vm2, %v386_v50 }
 0x2ff   :  { %1152 = vmatmul.mubr.msk.bf16.gmra.mrb[20].mxu1 %vm479_vm2, %v387_v49 }
 0x3ca   :  { %v1149_v4 = vpop.f32.mrb[16].mxu1 }
 0x3cb   :  { %v653_v8 = vadd.f32 %v1149_v4, %v1003_v3  ;;  %v615_v9 = vpop.f32.mrb[17].mxu1 }
 0x3cc   :  { %v651_v10 = vadd.f32 %v1003_v3, %v615_v9  ;;  %v1150_v11 = vpop.f32.mrb[18].mxu1 }
 0x3cd   :  { %v654_v12 = vadd.f32 %v1150_v11, %v1003_v3  ;;  %v618_v13 = vpop.f32.mrb[19].mxu1  ;;  %v661_v15 = vmax.f32 %v653_v8, 0.0 }
 0x3ce   :  { %v652_v14 = vadd.f32 %v1003_v3, %v618_v13  ;;  %v659_v17 = vmax.f32 %v651_v10, 0.0 }
 0x3cf   :  { %v662_v16 = vmax.f32 %v654_v12, 0.0 }
 0x3d0   :  { %v660_v18 = vmax.f32 %v652_v14, 0.0 }
 0x3d1   :  { %v668_v19 = vpack.c.bf16 %v662_v16, %v661_v15 }
 0x3d2   :  { %v667_v20 = vpack.c.bf16 %v660_v18, %v659_v17  ;;  %v1153_v21 = vpop.f32.mrb[20].mxu1 }
 0x3d3   :  { %v657_v22 = vadd.f32 %v1153_v21, %v1003_v3  ;;  %v631_v23 = vpop.f32.mrb[21].mxu1 }
 0x3d4   :  { %v655_v24 = vadd.f32 %v1003_v3, %v631_v23  ;;  %v1154_v25 = vpop.f32.mrb[22].mxu1  ;;  %1155 = vmatprep.subr.bf16.mxu0 %v667_v20 }
 0x3d5   :  { %v658_v26 = vadd.f32 %v1154_v25, %v1003_v3  ;;  %v634_v27 = vpop.f32.mrb[23].mxu1  ;;  %1156 = vmatpush3.bf16.msra.mxu0 %v667_v20  ;;  %v665_v29 = vmax.f32 %v657_v22, 0.0 }
 0x3d6   :  { %v656_v28 = vadd.f32 %v1003_v3, %v634_v27  ;;  %1157 = vmatprep.subr.bf16.mxu0 %v668_v19  ;;  %v663_v31 = vmax.f32 %v655_v24, 0.0 }
 0x3d7   :  { %v666_v30 = vmax.f32 %v658_v26, 0.0 }
 0x3d8   :  { %v664_v32 = vmax.f32 %v656_v28, 0.0 }
 0x3d9   :  { %v670_v33 = vpack.c.bf16 %v666_v30, %v665_v29  ;;  %1158 = vmatpush3.bf16.msra.mxu0 %v668_v19 }
 0x3da   :  { %v669_v34 = vpack.c.bf16 %v664_v32, %v663_v31 }
 0x3dc   :  { %1159 = vmatprep.subr.bf16.mxu0 %v669_v34 }
 0x3dd   :  { %1160 = vmatpush3.bf16.msra.mxu0 %v669_v34 }
 0x3de   :  { %1161 = vmatprep.subr.bf16.mxu0 %v670_v33 }
 0x3e1   :  { %1162 = vmatpush3.bf16.msra.mxu0 %v670_v33 }
 0x3e2   :  { %1171 = vmatprep.subr.bf16.mxu0 %v1237_v35 }
 0x3e4   :  { %1164 = vmatmul.mubr.msk.bf16.vlgmr.msra.gmra.mrb[8].mxu0 %vm114_vm0, %v1360_v5 }
 0x3e5   :  { %1167 = vmatprep.mubr.msk.bf16.mxu0 %vm114_vm0, %v1362_v6  ;;  %1172 = vmatpush3.bf16.msra.mxu0 %v1237_v35 }
 0x3e6   :  { %1173 = vmatprep.subr.bf16.mxu0 %v1238_v36 }
 0x3e9   :  { %1174 = vmatpush3.bf16.msra.mxu0 %v1238_v36 }
 0x3ea   :  { %1183 = vmatprep.subr.bf16.mxu0 %v1239_v37 }
 0x3ec   :  { %1168 = vmatmul.mubr.msk.bf16.gmra.mrb[12].mxu0 %vm114_vm0, %v1368_v7 }
 0x4b7   :  { %v1165_v38 = vpop.f32.mrb[8].mxu0 }
 0x4b8   :  { %v714_v39 = vpop.f32.mrb[9].mxu0 }
 0x4b9   :  { %v1166_v40 = vpop.f32.mrb[10].mxu0 }
 0x4ba   :  { %v746_v41 = vpack.c.bf16 %v1166_v40, %v1165_v38  ;;  %v717_v42 = vpop.f32.mrb[11].mxu0 }
 0x4bb   :  { %v745_v43 = vpack.c.bf16 %v717_v42, %v714_v39 }
 0x4bd   :  { %1175 = vmatprep.mubr.msk.bf16.mxu0 %vm479_vm2, %v745_v43 }
 0x4be   :  { %1176 = vmatmul.mubr.msk.bf16.vlgmr.msra.gmra.mrb[16].mxu0 %vm479_vm2, %v746_v41 }
 0x4bf   :  { %v1169_v5 = vpop.f32.mrb[12].mxu0  ;;  %1184 = vmatpush3.bf16.msra.mxu0 %v1239_v37 }
 0x4c0   :  { %v730_v6 = vpop.f32.mrb[13].mxu0  ;;  %1185 = vmatprep.subr.bf16.mxu0 %v1240_v44 }
 0x4c1   :  { %v1170_v45 = vpop.f32.mrb[14].mxu0 }
 0x4c2   :  { %v748_v46 = vpack.c.bf16 %v1170_v45, %v1169_v5  ;;  %v733_v7 = vpop.f32.mrb[15].mxu0 }
 0x4c3   :  { %v747_v47 = vpack.c.bf16 %v733_v7, %v730_v6  ;;  %1186 = vmatpush3.bf16.msra.mxu0 %v1240_v44 }
 0x4c5   :  { %1179 = vmatprep.mubr.msk.bf16.mxu0 %vm479_vm2, %v747_v47 }
 0x4c6   :  { %1180 = vmatmul.mubr.msk.bf16.gmra.mrb[20].mxu0 %vm479_vm2, %v748_v46 }
 0x4c7   :  { %1187 = vmatprep.mubr.msk.bf16.mxu0 %vm479_vm2, %v667_v20 }
 0x4ce   :  { %1188 = vmatmul.mubr.msk.bf16.vlgmr.msra.gmra.mrb[16].mxu0 %vm479_vm2, %v668_v19 }
 0x4cf   :  { %1191 = vmatprep.mubr.msk.bf16.mxu0 %vm479_vm2, %v669_v34 }
 0x4d6   :  { %1192 = vmatmul.mubr.msk.bf16.gmra.mrb[20].mxu0 %vm479_vm2, %v670_v33 }
 0x5a1   :  { %v1189_v49 = vpop.f32.mrb[16].mxu0 }
 0x5a2   :  { %v934_v50 = vadd.f32 %v1189_v49, %v1020_v48  ;;  %v896_v51 = vpop.f32.mrb[17].mxu0 }
 0x5a3   :  { %v932_v52 = vadd.f32 %v1020_v48, %v896_v51  ;;  %v1190_v53 = vpop.f32.mrb[18].mxu0 }
 0x5a4   :  { %942 = vst [vmem:[%s1466_s5 + $0x10] sm:$0xff] %v934_v50  ;;  %v935_v54 = vadd.f32 %v1190_v53, %v1020_v48  ;;  %v899_v55 = vpop.f32.mrb[19].mxu0 }
 0x5a5   :  { %940 = vst [vmem:[%s1466_s5] sm:$0xff] %v932_v52  ;;  %v933_v56 = vadd.f32 %v1020_v48, %v899_v55 }
 0x5a6   :  { %943 = vst [vmem:[%s1466_s5 + $0x18] sm:$0xff] %v935_v54 }
 0x5a7   :  { %941 = vst [vmem:[%s1466_s5 + $0x8] sm:$0xff] %v933_v56 }
 0x5a9   :  { %v1193_v57 = vpop.f32.mrb[20].mxu0 }
 0x5aa   :  { %v938_v58 = vadd.f32 %v1193_v57, %v1020_v48  ;;  %v912_v59 = vpop.f32.mrb[21].mxu0 }
 0x5ab   :  { %v936_v60 = vadd.f32 %v1020_v48, %v912_v59  ;;  %v1194_v61 = vpop.f32.mrb[22].mxu0 }
 0x5ac   :  { %946 = vst [vmem:[%s1466_s5 + $0x30] sm:$0xff] %v938_v58  ;;  %v939_v62 = vadd.f32 %v1194_v61, %v1020_v48  ;;  %v915_v63 = vpop.f32.mrb[23].mxu0 }
 0x5ad   :  { %944 = vst [vmem:[%s1466_s5 + $0x20] sm:$0xff] %v936_v60  ;;  %v937_v0 = vadd.f32 %v1020_v48, %v915_v63 }
 0x5ae   :  { %947 = vst [vmem:[%s1466_s5 + $0x38] sm:$0xff] %v939_v62 }
 0x5af   :  { %945 = vst [vmem:[%s1466_s5 + $0x28] sm:$0xff] %v937_v0 }
 0x5b0   :  { %952 = vsyncpa [#allocation3], 1 }
 0x5b1   :  { %953 = vsyncpa [#allocation5], 1 }

</bundles_post_ra>
